<compile_context>
chip_gen: v7x
topology: tpu7x:2x2x1
jax: 0.10.0
libtpu: 0.0.40
codegen_flags: <defaults>
</compile_context>

<pallas_src>
import math

import jax
import jax.numpy as jnp
import numpy as np
from jax import lax
from jax.experimental import pallas as pl
from jax.experimental.pallas import tpu as pltpu


# ------------------------------ helpers ------------------------------------- #

def _round_up(x, m):
    return ((x + m - 1) // m) * m


def _pad2(a, rows, cols):
    pr, pc = rows - a.shape[0], cols - a.shape[1]
    if pr or pc:
        a = jnp.pad(a, ((0, pr), (0, pc)))
    return a


_VMEM_LIMIT = 32 * 1024 * 1024  # explicit (safe on v5e/v6e/v7x; tiles below are << this)


# ------------------------------ kernels ------------------------------------- #

def _matmul_kernel(x_ref, w_ref, b_ref, o_ref, acc_ref):
    # x: (tm, tk)  w: (tn, tk)  b: (1, tn)  o: (tm, tn)  acc: (tm, tn) f32
    @pl.when(pl.program_id(2) == 0)
    def _():
        acc_ref[...] = jnp.zeros_like(acc_ref)

    # contract x dim1 with w dim1 -> feeds MXU directly, no in-kernel transpose
    acc_ref[...] += lax.dot_general(
        x_ref[...], w_ref[...],
        dimension_numbers=(((1,), (1,)), ((), ())),
        preferred_element_type=jnp.float32)

    @pl.when(pl.program_id(2) == pl.num_programs(2) - 1)
    def _():
        o_ref[...] = (acc_ref[...] + b_ref[...]).astype(o_ref.dtype)


def _grouped_kernel(bid_ref, x_ref, w_ref, b_ref, o_ref):
    # x: (bm, Fin)  w: (1, tn, Fin)  b: (1, 1, tn)  o: (bm, tn)
    del bid_ref  # consumed only by the index_maps
    acc = lax.dot_general(
        x_ref[...], w_ref[0],
        dimension_numbers=(((1,), (1,)), ((), ())),
        preferred_element_type=jnp.float32)
    o_ref[...] = (acc + b_ref[0]).astype(o_ref.dtype)


def _parallel_kernel(x_ref, w_ref, b_ref, o_ref):
    # x: (1, B, Fin)  w: (1, tn, Fin)  b: (1, 1, tn)  o: (B, tn)
    acc = lax.dot_general(
        x_ref[0], w_ref[0],
        dimension_numbers=(((1,), (1,)), ((), ())),
        preferred_element_type=jnp.float32)
    o_ref[...] = (acc + b_ref[0]).astype(o_ref.dtype)


# ------------------------------ wrappers ------------------------------------ #

def linear_single(x, weight, bias=None, *, tm=128, tn=256, tk=512):
    """int mc_sample_id: out = x @ W[s].T + b[s]  ->  (B, Fout). Tiled + pipelined."""
    B, Fin = x.shape
    Fout = weight.shape[0]

    tm = min(tm, _round_up(B, 8))
    tn = min(tn, _round_up(Fout, 128))
    tk = min(tk, _round_up(Fin, 128))
    M, N, K = _round_up(B, tm), _round_up(Fout, tn), _round_up(Fin, tk)

    x_p = _pad2(x, M, K)
    w_p = _pad2(weight, N, K)
    b_p = (jnp.zeros((1, N), x.dtype) if bias is None
           else _pad2(bias.reshape(1, Fout), 1, N))

    out = pl.pallas_call(
        _matmul_kernel,
        out_shape=jax.ShapeDtypeStruct((M, N), x.dtype),
        grid_spec=pltpu.PrefetchScalarGridSpec(
            num_scalar_prefetch=0,
            grid=(M // tm, N // tn, K // tk),
            in_specs=[
                pl.BlockSpec((tm, tk), lambda i, j, k: (i, k)),
                pl.BlockSpec((tn, tk), lambda i, j, k: (j, k)),
                pl.BlockSpec((1, tn), lambda i, j, k: (0, j)),
            ],
            out_specs=pl.BlockSpec((tm, tn), lambda i, j, k: (i, j)),
            scratch_shapes=[pltpu.VMEM((tm, tn), jnp.float32)]),
        compiler_params=pltpu.CompilerParams(
            dimension_semantics=("parallel", "parallel", "arbitrary"),
            vmem_limit_bytes=_VMEM_LIMIT),
    )(x_p, w_p, b_p)
    return out[:B, :Fout]


def linear_per_sample(x, weights, biases, mc_sample_id, *, bm=8, tn=256):
    """Per-row mc_sample_id: out[b] = W[id[b]] @ x[b] + b[id[b]]  ->  (B, Fout).

    Rows are sorted by id and packed into bm-row blocks outside the kernel
    (plain XLA ops), so consecutive grid steps reuse the resident weight tile
    and each step runs a real (bm, Fin) matmul instead of a 1-row matvec.
    """
    B, Fin = x.shape
    S, Fout, _ = weights.shape

    tn = min(tn, _round_up(Fout, 128))
    N = _round_up(Fout, tn)
    NJ = N // tn

    idx = (jnp.asarray(mc_sample_id).astype(jnp.int32)) % S

    # --- group rows by sample id (sort + pack into bm-row blocks) --------------
    order = jnp.argsort(idx)
    sorted_idx = idx[order]
    x_sorted = x[order]

    counts = jnp.bincount(idx, length=S).astype(jnp.int32)      # (S,)
    blocks_per_group = (counts + bm - 1) // bm                   # (S,)
    cum_blocks = jnp.cumsum(blocks_per_group)                    # inclusive
    group_block_start = cum_blocks - blocks_per_group            # exclusive
    group_row_start = jnp.cumsum(counts) - counts                # exclusive

    G = (B + S * (bm - 1) + bm - 1) // bm   # static upper bound on #blocks
    P = G * bm

    block_to_id = jnp.minimum(
        jnp.searchsorted(cum_blocks, jnp.arange(G, dtype=jnp.int32), side='right'),
        S - 1).astype(jnp.int32)

    rank = jnp.arange(B, dtype=jnp.int32) - group_row_start[sorted_idx]
    dest = group_block_start[sorted_idx] * bm + rank             # (B,)
    x_packed = jnp.zeros((P, Fin), x.dtype).at[dest].set(x_sorted)

    w_p = jnp.pad(weights, ((0, 0), (0, N - Fout), (0, 0))) if N != Fout else weights
    if biases is None:
        b_p = jnp.zeros((S, 1, N), x.dtype)
    else:
        b_p = (jnp.pad(biases, ((0, 0), (0, N - Fout))) if N != Fout
               else biases).reshape(S, 1, N)

    # TODO(synk): add a K (Fin) reduction grid axis for very large in_features.
    grid_spec = pltpu.PrefetchScalarGridSpec(
        num_scalar_prefetch=1,
        grid=(NJ, G),   # G innermost: weight tile (bid[g], j) reused across id-runs
        in_specs=[
            pl.BlockSpec((bm, Fin), lambda j, g, bid: (g, 0)),
            pl.BlockSpec((1, tn, Fin), lambda j, g, bid: (bid[g], j, 0)),
            pl.BlockSpec((1, 1, tn), lambda j, g, bid: (bid[g], 0, j)),
        ],
        out_specs=pl.BlockSpec((bm, tn), lambda j, g, bid: (g, j)),
    )
    out_packed = pl.pallas_call(
        _grouped_kernel,
        grid_spec=grid_spec,
        out_shape=jax.ShapeDtypeStruct((P, N), x.dtype),
        compiler_params=pltpu.CompilerParams(
            dimension_semantics=("parallel", "arbitrary"),
            vmem_limit_bytes=_VMEM_LIMIT),
    )(block_to_id, x_packed, w_p, b_p)

    out_sorted = out_packed[dest][:, :Fout]
    # un-permute back to the original row order
    return jnp.zeros((B, Fout), x.dtype).at[order].set(out_sorted)


def linear_parallel(x, weights, biases, *, tn=256):
    """parallel_eval: out[b, s] = W[s] @ x[b(,s)] + bias[s]  ->  (B, S, Fout)."""
    S, Fout, Fin = weights.shape
    tn = min(tn, _round_up(Fout, 128))
    N = _round_up(Fout, tn)
    NJ = N // tn

    if x.ndim == 3:
        # already per-sample expanded input (B, S, Fin)
        B = x.shape[0]
        xs = jnp.transpose(x, (1, 0, 2))            # (S, B, Fin)
        x_map = lambda s, j: (s, 0, 0)
    else:
        # no S-fold broadcast of x: the single (B, Fin) block has a constant block
        # index, so it is DMA'd once and stays resident in VMEM across the grid.
        B = x.shape[0]
        xs = x[None]                                 # (1, B, Fin)
        x_map = lambda s, j: (0, 0, 0)

    w_p = jnp.pad(weights, ((0, 0), (0, N - Fout), (0, 0))) if N != Fout else weights
    if biases is None:
        b_p = jnp.zeros((S, 1, N), x.dtype)
    else:
        b_p = (jnp.pad(biases, ((0, 0), (0, N - Fout))) if N != Fout
               else biases).reshape(S, 1, N)

    # TODO(synk): also tile the batch dim (and add a K axis) for very large B / Fin.
    out = pl.pallas_call(
        _parallel_kernel,
        out_shape=jax.ShapeDtypeStruct((B, S * N), x.dtype),
        grid_spec=pltpu.PrefetchScalarGridSpec(
            num_scalar_prefetch=0,
            grid=(S, NJ),
            in_specs=[
                pl.BlockSpec((1, B, Fin), x_map),
                pl.BlockSpec((1, tn, Fin), lambda s, j: (s, j, 0)),
                pl.BlockSpec((1, 1, tn), lambda s, j: (s, 0, j)),
            ],
            # write (B, S, Fout) layout directly: lane-dense (B, tn) blocks at
            # column-block s*NJ + j of a (B, S*N) output; final reshape is free.
            out_specs=pl.BlockSpec((B, tn), lambda s, j: (0, s * NJ + j)),
        ),
        compiler_params=pltpu.CompilerParams(
            dimension_semantics=("parallel", "parallel"),
            vmem_limit_bytes=_VMEM_LIMIT),
    )(xs, w_p, b_p)
    out = out.reshape(B, S, N)
    return out[:, :, :Fout] if N != Fout else out


class BayesLinearEMP:
    """JAX/Pallas port of scalablebdl BayesLinearEMP (forward only)."""

    def __init__(self, in_features, out_features, bias=True, num_mc_samples=20,
                 key=jax.random.PRNGKey(0)):
        self.in_features = in_features
        self.out_features = out_features
        self.num_mc_samples = num_mc_samples
        self.bias = bool(bias)
        self.mc_sample_id = None
        self.parallel_eval = False
        stdv = 1.0 / math.sqrt(in_features)
        kw, kb = jax.random.split(key)
        self.weights = jax.random.uniform(
            kw, (num_mc_samples, out_features, in_features),
            dtype=jnp.float32, minval=-stdv, maxval=stdv)
        self.biases = (jax.random.uniform(
            kb, (num_mc_samples, out_features),
            dtype=jnp.float32, minval=-stdv, maxval=stdv) if self.bias else None)

    def __call__(self, x):
        if self.parallel_eval:
            return linear_parallel(x, self.weights, self.biases)
        elif isinstance(self.mc_sample_id, int):
            s = self.mc_sample_id % self.num_mc_samples
            return linear_single(x, self.weights[s],
                                 self.biases[s] if self.bias else None)
        else:
            # NOTE: returns (B, Fout); torch's .squeeze() would drop dims for B==1.
            return linear_per_sample(x, self.weights, self.biases,
                                     self.mc_sample_id)


# -------------------------------- demo --------------------------------------- #

if __name__ == "__main__":
    B, Fin, Fout, S = 8, 32, 64, 20
    key = jax.random.PRNGKey(0)
    k_x, k_id, k_mod = jax.random.split(key, 3)

    x = jax.random.normal(k_x, (B, Fin), dtype=jnp.float32)
    layer = BayesLinearEMP(Fin, Fout, bias=True, num_mc_samples=S, key=k_mod)

    # --- mode 1: integer mc_sample_id ---
    layer.mc_sample_id = 3
    layer.parallel_eval = False
    out1 = jax.block_until_ready(layer(x))
    ref1 = x @ layer.weights[3].T + layer.biases[3]
    np.testing.assert_allclose(np.asarray(out1), np.asarray(ref1),
                               rtol=1e-5, atol=1e-5)

    # --- mode 2: per-example mc_sample_id array ---
    ids = jax.random.randint(k_id, (B,), 0, S, dtype=jnp.int32)
    layer.mc_sample_id = ids
    out2 = jax.block_until_ready(layer(x))
    ref2 = jnp.einsum('boi,bi->bo', layer.weights[ids], x) + layer.biases[ids]
    np.testing.assert_allclose(np.asarray(out2), np.asarray(ref2),
                               rtol=1e-5, atol=1e-5)

    # --- mode 3: parallel_eval over all MC samples ---
    layer.parallel_eval = True
    out3 = jax.block_until_ready(layer(x))
    ref3 = jnp.einsum('bi,soi->bso', x, layer.weights) + layer.biases[None]
    np.testing.assert_allclose(np.asarray(out3), np.asarray(ref3),
                               rtol=1e-5, atol=1e-5)

    assert out1.shape == (B, Fout)
    assert out2.shape == (B, Fout)
    assert out3.shape == (B, S, Fout)
    print("KERNEL_OK")
</pallas_src>

<mosaic_0001>
module attributes {stable_mosaic.version = 11 : i64} {
  func.func @_matmul_kernel(%arg0: i32, %arg1: i32, %arg2: i32, %arg3: memref<8x128xf32, #tpu.memory_space<vmem>>, %arg4: memref<128x128xf32, #tpu.memory_space<vmem>>, %arg5: memref<1x128xf32, #tpu.memory_space<vmem>>, %arg6: memref<8x128xf32, #tpu.memory_space<vmem>>, %arg7: memref<8x128xf32, #tpu.memory_space<vmem>>) attributes {dimension_semantics = [#tpu.dimension_semantics<parallel>, #tpu.dimension_semantics<parallel>, #tpu.dimension_semantics<arbitrary>], iteration_bounds = array<i64: 1, 1, 1>, scalar_prefetch = 0 : i64, scratch_operands = 1 : i64, tpu.core_type = #tpu.core_type<tc>, window_params = [{transform_indices = @transform_0, window_bounds = array<i64: 8, 128>}, {transform_indices = @transform_1, window_bounds = array<i64: 128, 128>}, {transform_indices = @transform_2, window_bounds = array<i64: 1, 128>}, {transform_indices = @transform_3, window_bounds = array<i64: 8, 128>}]} {
    %c0_i32 = arith.constant 0 : i32
    %0 = arith.cmpi eq, %arg2, %c0_i32 : i32
    %1 = arith.extui %0 : i1 to i32
    %c0_i32_0 = arith.constant 0 : i32
    %2 = arith.cmpi ne, %1, %c0_i32_0 : i32
    scf.if %2 {
      %cst_10 = arith.constant 0.000000e+00 : f32
      %12 = vector.broadcast %cst_10 : f32 to vector<8x128xf32>
      %c0_11 = arith.constant 0 : index
      %c0_12 = arith.constant 0 : index
      %13 = vector.load %arg7[%c0_11, %c0_12] : memref<8x128xf32, #tpu.memory_space<vmem>>, vector<8x128xf32>
      tpu.vector_store %arg7[%c0_11, %c0_12], %12 {strides = array<i32>} : memref<8x128xf32, #tpu.memory_space<vmem>>, vector<8x128xf32>,
    } else {
    }
    %c0 = arith.constant 0 : index
    %c0_1 = arith.constant 0 : index
    %3 = vector.load %arg7[%c0, %c0_1] : memref<8x128xf32, #tpu.memory_space<vmem>>, vector<8x128xf32>
    %c0_2 = arith.constant 0 : index
    %c0_3 = arith.constant 0 : index
    %4 = vector.load %arg3[%c0_2, %c0_3] : memref<8x128xf32, #tpu.memory_space<vmem>>, vector<8x128xf32>
    %c0_4 = arith.constant 0 : index
    %c0_5 = arith.constant 0 : index
    %5 = vector.load %arg4[%c0_4, %c0_5] : memref<128x128xf32, #tpu.memory_space<vmem>>, vector<128x128xf32>
    %cst = arith.constant dense<0.000000e+00> : vector<8x128xf32>
    %6 = tpu.matmul %4, %5, %cst {dimension_numbers = #tpu.dot_dimension_numbers<[1], [1], [0], [0], [0, 0, 1, 0], [], []>} : vector<8x128xf32>, vector<128x128xf32>, vector<8x128xf32> -> vector<8x128xf32>
    %7 = arith.addf %3, %6 : vector<8x128xf32>
    %c0_6 = arith.constant 0 : index
    %c0_7 = arith.constant 0 : index
    %8 = vector.load %arg7[%c0_6, %c0_7] : memref<8x128xf32, #tpu.memory_space<vmem>>, vector<8x128xf32>
    tpu.vector_store %arg7[%c0_6, %c0_7], %7 {strides = array<i32>} : memref<8x128xf32, #tpu.memory_space<vmem>>, vector<8x128xf32>,
    %c0_i32_8 = arith.constant 0 : i32
    %9 = arith.cmpi eq, %arg2, %c0_i32_8 : i32
    %10 = arith.extui %9 : i1 to i32
    %c0_i32_9 = arith.constant 0 : i32
    %11 = arith.cmpi ne, %10, %c0_i32_9 : i32
    scf.if %11 {
      %c0_10 = arith.constant 0 : index
      %c0_11 = arith.constant 0 : index
      %12 = vector.load %arg7[%c0_10, %c0_11] : memref<8x128xf32, #tpu.memory_space<vmem>>, vector<8x128xf32>
      %c0_12 = arith.constant 0 : index
      %c0_13 = arith.constant 0 : index
      %13 = vector.load %arg5[%c0_12, %c0_13] : memref<1x128xf32, #tpu.memory_space<vmem>>, vector<1x128xf32>
      %14 = vector.broadcast %13 : vector<1x128xf32> to vector<8x128xf32>
      %15 = arith.addf %12, %14 : vector<8x128xf32>
      %c0_14 = arith.constant 0 : index
      %c0_15 = arith.constant 0 : index
      %16 = vector.load %arg6[%c0_14, %c0_15] : memref<8x128xf32, #tpu.memory_space<vmem>>, vector<8x128xf32>
      tpu.vector_store %arg6[%c0_14, %c0_15], %15 {strides = array<i32>} : memref<8x128xf32, #tpu.memory_space<vmem>>, vector<8x128xf32>,
    } else {
    }
    return
  }
  func.func @transform_0(%arg0: i32, %arg1: i32, %arg2: i32) -> (i32, i32) {
    %c0_i32 = arith.constant 0 : i32
    return %arg0, %arg2 : i32, i32
  }
  func.func @transform_1(%arg0: i32, %arg1: i32, %arg2: i32) -> (i32, i32) {
    %c0_i32 = arith.constant 0 : i32
    return %arg1, %arg2 : i32, i32
  }
  func.func @transform_2(%arg0: i32, %arg1: i32, %arg2: i32) -> (i32, i32) {
    %c0_i32 = arith.constant 0 : i32
    %c0_i32_0 = arith.constant 0 : i32
    return %c0_i32, %arg1 : i32, i32
  }
  func.func @transform_3(%arg0: i32, %arg1: i32, %arg2: i32) -> (i32, i32) {
    %c0_i32 = arith.constant 0 : i32
    return %arg0, %arg1 : i32, i32
  }
}

</mosaic_0001>

<bundles_post_ra>
// kernel: tpu_custom_call.1
= control target key start
LH: loop header
LB: loop body
LE: loop exit
PB: predicated region body
PF: predicated region fallthrough
CT: control target
= control target key end

     0   :  { %8 = vsyncpa [#allocation4], 0  ;;  %s396_s0 = inlined_call_operand.hbm [shape: f32[8,128], index: 0, kind: input, shape index: {}]   ;;  %s397_s1 = inlined_call_operand.hbm [shape: f32[128,128], index: 1, kind: input, shape index: {}]   ;;  %s398_s2 = inlined_call_operand.vmem [shape: f32[1,128], index: 2, kind: input, shape index: {}]   ;;  %s399_s3 = inlined_call_operand.hbm [shape: f32[8,128], index: 3, kind: output, shape index: {}]  }
   0x1   :  { %9 = vsyncpa [#allocation7], 0 }
   0x2   :  { %10 = vsyncpa [#allocation5], 0  ;;  %s322_s12 = smov [#allocation3]   ;;  %s323_s14 = smov [#allocation6]  }
   0x3   :  { %s17_s13 = sshll.u32 %s322_s12, 4  ;;  %s26_s15 = sshll.u32 %s323_s14, 4  ;;  %s18_s13 = int_to_ptr.vmem [resolvable:$true] %s17_s13  ;;  %s350_s15 = int_to_ptr.vmem [resolvable:$true] %s26_s15 }
   0x4   :  { %s250_s18 = scalar_lea.hbm %s396_s0, 128 }
   0x5   :  { %p251_p0 = scmp.ne.s32.totalorder %s396_s0, %s250_s18  ;;  %p254_p1 = scmp.lt.u32.totalorder %s250_s18, %s396_s0 }
   0x7   :  { %p256_p2 = pnand %p254_p1, %p251_p0 }
   0x9   :  { %259 = shalt.err (!%p256_p2)
}
   0xa   :  { %s260_s23 = scalar_lea.vmem %s18_s13, 128  ;;  %p265_p4 = scmp.lt.s32.totalorder %s18_s13, %s18_s13 }
   0xb   :  { %p261_p3 = scmp.ne.s32.totalorder %s18_s13, %s260_s23  ;;  %p266_p5 = scmp.lt.s32.totalorder %s260_s23, %s260_s23 }
   0xd   :  { %p267_p6 = por %p266_p5, %p265_p4 }
   0xf   :  { %p268_p7 = pnand %p267_p6, %p261_p3 }
  0x11   :  { %271 = shalt.err (!%p268_p7)
}
  0x12   :  { %20 = dma.hbm_to_vmem [thread:$0]  %s396_s0, 128, %s18_s13, [#allocation4]  }
  0x13   :  { %s272_s28 = scalar_lea.hbm %s397_s1, 2048 }
  0x14   :  { %p273_p8 = scmp.ne.s32.totalorder %s397_s1, %s272_s28  ;;  %p276_p9 = scmp.lt.u32.totalorder %s272_s28, %s397_s1 }
  0x16   :  { %p278_p10 = pnand %p276_p9, %p273_p8 }
  0x18   :  { %281 = shalt.err (!%p278_p10)
}
  0x19   :  { %s282_s6 = scalar_lea.vmem %s350_s15, 2048  ;;  %p287_p12 = scmp.lt.s32.totalorder %s350_s15, %s350_s15 }
  0x1a   :  { %p283_p11 = scmp.ne.s32.totalorder %s350_s15, %s282_s6  ;;  %p288_p13 = scmp.lt.s32.totalorder %s282_s6, %s282_s6 }
  0x1c   :  { %p289_p0 = por %p288_p13, %p287_p12 }
  0x1e   :  { %p290_p1 = pnand %p289_p0, %p283_p11 }
  0x20   :  { %293 = shalt.err (!%p290_p1)
}
  0x21   :  { %s324_s0 = smov 128   ;;  %s325_s7 = smov 8  }
  0x22   :  { %32 = dma.hbm_to_vmem [thread:$0]  %s397_s1, 2048, %s350_s15, [#allocation7], %s324_s0, %s324_s0, %s325_s7  }
  0x23   :  { %316 = dma.done.wait [#allocation4], 128  }
  0x24   :  { %317 = vsyncadd [#allocation4], 4294967168 }
  0x25   :  { %318 = dma.done.wait [#allocation7], 2048  }
  0x26   :  { %319 = vsyncadd [#allocation7], 4294965248  ;;  %v326_v0 = vmov 0.0|0.0   ;;  %vm327_vm0 = vmmov 0   ;;  %v328_v1 = vmov 0.0   ;;  %v48_v2 = vld [vmem:[#allocation6] sm:$0xff] }
  0x27   :  { %218 = vmatprep.subr.bf16.mxu0 %v326_v0  ;;  %215 = vmatprep.mubr.msk.f32.mxu0 %vm327_vm0, %v328_v1  ;;  %v49_v3 = vld [vmem:[#allocation6 + $0x8] sm:$0xff]  ;;  %v50_v5 = vld [vmem:[#allocation6 + $0x10] sm:$0xff]  ;;  %v51_v6 = vld [vmem:[#allocation6 + $0x18] sm:$0xff]  ;;  %s329_s11 = smov [#allocation8]  }
  0x28   :  { %v219_v4 = vpack.c.bf16 %v49_v3, %v48_v2  ;;  %v222_v7 = vpack.c.bf16 %v51_v6, %v50_v5  ;;  %v52_v8 = vld [vmem:[#allocation6 + $0x20] sm:$0xff]  ;;  %v53_v9 = vld [vmem:[#allocation6 + $0x28] sm:$0xff]  ;;  %v54_v11 = vld [vmem:[#allocation6 + $0x30] sm:$0xff]  ;;  %s155_s12 = sshll.u32 %s329_s11, 4  ;;  %s156_s12 = int_to_ptr.vmem [resolvable:$true] %s155_s12 }
  0x29   :  { %v225_v10 = vpack.c.bf16 %v53_v9, %v52_v8  ;;  %v55_v12 = vld [vmem:[#allocation6 + $0x38] sm:$0xff]  ;;  %v56_v14 = vld [vmem:[#allocation6 + $0x40] sm:$0xff]  ;;  %v57_v15 = vld [vmem:[#allocation6 + $0x48] sm:$0xff]  ;;  %s294_s13 = scalar_lea.vmem %s156_s12, 128  ;;  %p299_p3 = scmp.lt.s32.totalorder %s156_s12, %s156_s12 }
  0x2a   :  { %220 = vmatpush3.bf16.xpose.msra.mxu0 %v219_v4  ;;  %v228_v13 = vpack.c.bf16 %v55_v12, %v54_v11  ;;  %v231_v16 = vpack.c.bf16 %v57_v15, %v56_v14  ;;  %v58_v17 = vld [vmem:[#allocation6 + $0x50] sm:$0xff]  ;;  %v59_v18 = vld [vmem:[#allocation6 + $0x58] sm:$0xff]  ;;  %v60_v20 = vld [vmem:[#allocation6 + $0x60] sm:$0xff]  ;;  %p295_p2 = scmp.ne.s32.totalorder %s156_s12, %s294_s13  ;;  %p300_p4 = scmp.lt.s32.totalorder %s294_s13, %s294_s13 }
  0x2b   :  { %221 = vmatprep.subr.bf16.mxu0 %v326_v0  ;;  %v234_v19 = vpack.c.bf16 %v59_v18, %v58_v17  ;;  %v61_v21 = vld [vmem:[#allocation6 + $0x68] sm:$0xff]  ;;  %v62_v23 = vld [vmem:[#allocation6 + $0x70] sm:$0xff]  ;;  %v63_v24 = vld [vmem:[#allocation6 + $0x78] sm:$0xff] }
  0x2c   :  { %v237_v22 = vpack.c.bf16 %v61_v21, %v60_v20  ;;  %v240_v25 = vpack.c.bf16 %v63_v24, %v62_v23  ;;  %v47_v26 = vld [vmem:[#allocation3] sm:$0xff]  ;;  %p301_p5 = por %p300_p4, %p299_p3 }
  0x2d   :  { %v165_v27 = vld [vmem:[%s398_s2] ss:$0 sm:$0xff] }
  0x2e   :  { %p302_p6 = pnand %p301_p5, %p295_p2 }
  0x32   :  { %223 = vmatpush3.bf16.xpose.msra.mxu0 %v222_v7 }
  0x33   :  { %224 = vmatprep.subr.bf16.mxu0 %v326_v0 }
  0x3a   :  { %226 = vmatpush3.bf16.xpose.msra.mxu0 %v225_v10 }
  0x3b   :  { %227 = vmatprep.subr.bf16.mxu0 %v326_v0 }
  0x42   :  { %229 = vmatpush3.bf16.xpose.msra.mxu0 %v228_v13 }
  0x43   :  { %230 = vmatprep.subr.bf16.mxu0 %v326_v0 }
  0x4a   :  { %232 = vmatpush3.bf16.xpose.msra.mxu0 %v231_v16 }
  0x4b   :  { %233 = vmatprep.subr.bf16.mxu0 %v326_v0 }
  0x52   :  { %235 = vmatpush3.bf16.xpose.msra.mxu0 %v234_v19 }
  0x53   :  { %236 = vmatprep.subr.bf16.mxu0 %v326_v0 }
  0x5a   :  { %238 = vmatpush3.bf16.xpose.msra.mxu0 %v237_v22 }
  0x5b   :  { %239 = vmatprep.subr.bf16.mxu0 %v326_v0 }
  0x62   :  { %241 = vmatpush3.bf16.xpose.msra.mxu0 %v240_v25 }
  0x69   :  { %216 = vmatmul.mubr.f32.vlgmr.msra.gmra.mrb[0].mxu0 %v47_v26 }
 0x13c   :  { %v130_v28 = vpop.f32.mrb[0].mxu0 }
 0x13d   :  { %v147_v29 = vadd.f32 %v165_v27, %v130_v28  ;;  %v217_v30 = vpop.f32.mrb[1].mxu0 }
 0x13f   :  { %148 = vst [vmem:[#allocation8] sm:$0xff] %v147_v29 }
 0x140   :  { %305 = shalt.err (!%p302_p6)
}
 0x141   :  { %s306_s16 = scalar_lea.hbm %s399_s3, 128 }
 0x142   :  { %p307_p7 = scmp.ne.s32.totalorder %s399_s3, %s306_s16  ;;  %p310_p8 = scmp.lt.u32.totalorder %s306_s16, %s399_s3 }
 0x144   :  { %p312_p9 = pnand %p310_p8, %p307_p7 }
 0x146   :  { %315 = shalt.err (!%p312_p9)
}
 0x147   :  { %158 = dma.vmem_to_hbm [thread:$0]  %s156_s12, 128, %s399_s3, [#allocation5]  }
 0x148   :  { %320 = dma.done.wait [#allocation5], 128  }
 0x149   :  { %321 = vsyncadd [#allocation5], 4294967168 }
 0x14a   :  { %162 = vsyncpa [#allocation4], 1 }
 0x14b   :  { %163 = vsyncpa [#allocation7], 1 }
 0x14c   :  { %164 = vsyncpa [#allocation5], 1 }

</bundles_post_ra>
